<compile_context>
chip_gen: v5e
topology: v5e:2x2
jax: 0.10.0
libtpu: 0.0.40
codegen_flags: <defaults>
</compile_context>

<pallas_src>
import jax
import jax.numpy as jnp
from jax.experimental import pallas as pl
from jax.experimental.pallas import tpu as pltpu


def _concat_kernel(x_ref, z_ref, o_ref):
    bt, cx, thw = x_ref.shape
    cz = z_ref.shape[1]
    # Two direct slice-stores: each source goes straight to its channel range.
    o_ref[:, :cx, :] = x_ref[...]
    # z_ref is (bt, Cz, 1): channels already on sublanes -> lane-broadcast only.
    o_ref[:, cx:, :] = jnp.broadcast_to(z_ref[...], (bt, cz, thw))


def _round_up(v, m):
    return (v + m - 1) // m * m


def _vmem_capacity_bytes():
    # Generation-aware budget (64 MiB/TC on v7x, 128 MiB on v5e/v6e).
    try:
        return int(pltpu.get_tpu_info().vmem_capacity_bytes)
    except Exception:
        return 64 << 20  # conservative fallback (v7x per-TC)


def _select_tiles(n, cx, ct, hw_p, itemsize, vmem_cap):
    """Pick (batch_tile, spatial_tile) for the (N, C, HW) layout."""
    # Combined (x block + out block) bytes per grid step. ~12 MiB/step
    # (~24 MiB double-buffered) amortizes the ~0.35us per-step overhead even
    # at v7x's 3.2 TB/s HBM while staying under its 64 MiB physical VMEM.
    target = min(12 << 20, max(2 << 20, vmem_cap // 5))
    per_col = (cx + ct) * itemsize          # x + out bytes per spatial column

    # Spatial tile: lane-aligned multiple of 128, capped at the padded extent.
    max_cols = max(128, (target // max(per_col, 1)) // 128 * 128)
    t_hw = min(hw_p, max_cols)

    # Batch tile: largest divisor of n that stays at/below the target.
    per_batch = per_col * t_hw
    bt = 1
    for d in range(n, 0, -1):
        if n % d == 0 and d * per_batch <= target:
            bt = d
            break

    # Keep the grid at >= ~16 steps (4x pipeline depth x 2 v7x TensorCores)
    # when there is enough total work, without dropping below ~1 MiB/step.
    min_step = 1 << 20
    total = n * per_col * hw_p

    def steps(bt_, t_):
        return (n // bt_) * pl.cdiv(hw_p, t_)

    if total >= 16 * min_step:
        while steps(bt, t_hw) < 16:
            if bt > 1:
                nd = max(d for d in range(1, bt) if n % d == 0)
                if nd * per_col * t_hw < min_step:
                    break
                bt = nd
            elif t_hw > 128:
                nt = max(128, (t_hw // 2) // 128 * 128)
                if bt * per_col * nt < min_step:
                    break
                t_hw = nt
            else:
                break
    return bt, t_hw


def concatenator(x, z):
    """Pallas equivalent of Concatenator.forward(x, z)."""
    n, cx, h, w = x.shape
    n_z, cz = z.shape
    assert n == n_z, "batch dims must match"
    assert x.dtype == z.dtype, "torch.cat requires matching dtypes"

    hw = h * w
    ct = cx + cz
    itemsize = jnp.dtype(x.dtype).itemsize
    sub = max(8, 32 // max(itemsize, 1))      # sublane pack for this dtype

    # Lane-align the flattened spatial axis so output stores are unmasked.
    hw_p = _round_up(hw, 128)

    vmem_cap = _vmem_capacity_bytes()
    bt, t_hw = _select_tiles(n, cx, ct, hw_p, itemsize, vmem_cap)

    x_flat = x.reshape(n, cx, hw)             # glue reshapes in plain JAX
    if hw_p != hw:
        x_flat = jnp.pad(x_flat, ((0, 0), (0, 0), (0, hw_p - hw)))
    z3 = z.reshape(n, cz, 1)                  # channels -> sublane axis

    # Spatial axis innermost: z's block index is constant along it.
    grid = (n // bt, pl.cdiv(hw_p, t_hw))

    # Scoped-VMEM request sized to the actual double-buffered footprint plus
    # headroom, capped below physical capacity: keeps big tiles legal on v5e's
    # 16 MiB default without over-asking on v7x's 64 MiB physical VMEM.
    x_blk = bt * _round_up(cx, sub) * t_hw * itemsize
    o_blk = bt * _round_up(ct, sub) * t_hw * itemsize
    z_blk = bt * _round_up(cz, sub) * 128 * itemsize
    vmem_limit = 2 * (x_blk + o_blk + z_blk) + (4 << 20)
    vmem_limit = int(min(max(vmem_limit, 16 << 20),
                         max(vmem_cap - (16 << 20), 16 << 20)))

    # Pure-bandwidth op: tell XLA's scheduler there are no flops here.
    cost = pl.CostEstimate(
        flops=0,
        transcendentals=0,
        bytes_accessed=(n * cx * hw + n * cz + n * ct * hw) * itemsize,
    )

    out_flat = pl.pallas_call(
        _concat_kernel,
        out_shape=jax.ShapeDtypeStruct((n, ct, hw_p), x.dtype),
        grid=grid,
        in_specs=[
            # x: (bt, Cx, t_hw) lane-dense tile
            pl.BlockSpec((bt, cx, t_hw), lambda b, s: (b, 0, s)),
            # z: (bt, Cz, 1) tiny block; constant along the inner spatial axis
            pl.BlockSpec((bt, cz, 1), lambda b, s: (b, 0, 0)),
        ],
        out_specs=pl.BlockSpec((bt, ct, t_hw), lambda b, s: (b, 0, s)),
        compiler_params=pltpu.CompilerParams(
            dimension_semantics=("parallel", "parallel"),
            vmem_limit_bytes=vmem_limit,
        ),
        cost_estimate=cost,
    )(x_flat, z3)

    if hw_p != hw:
        out_flat = out_flat[:, :, :hw]
    return out_flat.reshape(n, ct, h, w)


if __name__ == "__main__":
    key = jax.random.PRNGKey(0)
    kx, kz = jax.random.split(key)

    N, CX, H, W = 2, 4, 16, 16
    CZ = 4

    x = jax.random.normal(kx, (N, CX, H, W), dtype=jnp.float32)
    z = jax.random.normal(kz, (N, CZ), dtype=jnp.float32)

    out = concatenator(x, z)
    out = jax.block_until_ready(out)

    # Reference (plain JAX) check of the PyTorch semantics.
    ref = jnp.concatenate(
        [x, jnp.broadcast_to(z[:, :, None, None], (N, CZ, H, W))], axis=1
    )
    assert out.shape == (N, CX + CZ, H, W)
    assert jnp.allclose(out, ref), "mismatch vs reference"

    print("KERNEL_OK")
</pallas_src>

<mosaic_0001>
module attributes {stable_mosaic.version = 11 : i64} {
  func.func @_concat_kernel(%arg0: i32, %arg1: i32, %arg2: memref<2x4x256xf32, #tpu.memory_space<vmem>>, %arg3: memref<2x4x1xf32, #tpu.memory_space<vmem>>, %arg4: memref<2x8x256xf32, #tpu.memory_space<vmem>>) attributes {dimension_semantics = [#tpu.dimension_semantics<parallel>, #tpu.dimension_semantics<parallel>], iteration_bounds = array<i64: 1, 1>, scalar_prefetch = 0 : i64, scratch_operands = 0 : i64, tpu.core_type = #tpu.core_type<tc>, window_params = [{transform_indices = @transform_0, window_bounds = array<i64: 2, 4, 256>}, {transform_indices = @transform_1, window_bounds = array<i64: 2, 4, 1>}, {transform_indices = @transform_2, window_bounds = array<i64: 2, 8, 256>}]} {
    %c0 = arith.constant 0 : index
    %c0_0 = arith.constant 0 : index
    %c0_1 = arith.constant 0 : index
    %0 = vector.load %arg2[%c0, %c0_0, %c0_1] : memref<2x4x256xf32, #tpu.memory_space<vmem>>, vector<2x4x256xf32>
    %c0_2 = arith.constant 0 : index
    %c0_3 = arith.constant 0 : index
    %c0_4 = arith.constant 0 : index
    %1 = vector.load %arg4[%c0_2, %c0_3, %c0_4] : memref<2x8x256xf32, #tpu.memory_space<vmem>>, vector<2x4x256xf32>
    tpu.vector_store %arg4[%c0_2, %c0_3, %c0_4], %0 {strides = array<i32>} : memref<2x8x256xf32, #tpu.memory_space<vmem>>, vector<2x4x256xf32>,
    %c0_5 = arith.constant 0 : index
    %c0_6 = arith.constant 0 : index
    %c0_7 = arith.constant 0 : index
    %2 = vector.load %arg3[%c0_5, %c0_6, %c0_7] : memref<2x4x1xf32, #tpu.memory_space<vmem>>, vector<2x4x1xf32>
    %3 = vector.shape_cast %2 : vector<2x4x1xf32> to vector<2x4x1xf32>
    %4 = vector.broadcast %3 : vector<2x4x1xf32> to vector<2x4x256xf32>
    %c0_8 = arith.constant 0 : index
    %c4 = arith.constant 4 : index
    %c0_9 = arith.constant 0 : index
    %5 = vector.load %arg4[%c0_8, %c4, %c0_9] : memref<2x8x256xf32, #tpu.memory_space<vmem>>, vector<2x4x256xf32>
    tpu.vector_store %arg4[%c0_8, %c4, %c0_9], %4 {strides = array<i32>} : memref<2x8x256xf32, #tpu.memory_space<vmem>>, vector<2x4x256xf32>,
    return
  }
  func.func @transform_0(%arg0: i32, %arg1: i32) -> (i32, i32, i32) {
    %c0_i32 = arith.constant 0 : i32
    %c0_i32_0 = arith.constant 0 : i32
    return %arg0, %c0_i32, %arg1 : i32, i32, i32
  }
  func.func @transform_1(%arg0: i32, %arg1: i32) -> (i32, i32, i32) {
    %c0_i32 = arith.constant 0 : i32
    %c0_i32_0 = arith.constant 0 : i32
    %c0_i32_1 = arith.constant 0 : i32
    return %arg0, %c0_i32, %c0_i32_0 : i32, i32, i32
  }
  func.func @transform_2(%arg0: i32, %arg1: i32) -> (i32, i32, i32) {
    %c0_i32 = arith.constant 0 : i32
    %c0_i32_0 = arith.constant 0 : i32
    return %arg0, %c0_i32, %arg1 : i32, i32, i32
  }
}

</mosaic_0001>

<bundles_post_ra>
// kernel: tpu_custom_call.1
= control target key start
LH: loop header
LB: loop body
LE: loop exit
PB: predicated region body
PF: predicated region fallthrough
CT: control target
= control target key end

     0   :  { %7 = vsyncpa [#allocation3], 0  ;;  %s178_s0 = inlined_call_operand.hbm [shape: f32[2,4,256], index: 0, kind: input, shape index: {}]   ;;  %s179_s1 = inlined_call_operand.vmem [shape: f32[2,4,1], index: 1, kind: input, shape index: {}]   ;;  %s180_s2 = inlined_call_operand.hbm [shape: f32[2,8,256], index: 2, kind: output, shape index: {}]  }
   0x1   :  { %8 = vsyncpa [#allocation4], 0  ;;  %s13_s11 = sshll.u32 %s178_s0, 4  ;;  %s144_s12 = smov [#allocation2]   ;;  %s14_s11 = int_to_ptr.hbm [resolvable:$true] %s13_s11 }
   0x2   :  { %s15_s13 = sshll.u32 %s144_s12, 4  ;;  %s145_s14 = smov 128   ;;  %s16_s13 = int_to_ptr.vmem [resolvable:$true] %s15_s13 }
   0x3   :  { %s146_s15 = smov 8  }
   0x4   :  { %21 = dma.hbm_to_vmem [thread:$0]  %s14_s11, 256, %s16_s13, [#allocation3], %s145_s14, %s145_s14, %s146_s15  }
   0x5   :  { %140 = dma.done.wait [#allocation3], 256  }
   0x6   :  { %141 = vsyncadd [#allocation3], 4294967040  ;;  %v147_v0 = vmov 0   ;;  %v47_v1 = vld [vmem:[%s179_s1] sm:$0xf]  ;;  %v28_v3 = vld [vmem:[#allocation2] sm:$0xff] }
   0x7   :  { %91 = vset.pattern.permute.xlu0 %v147_v0  ;;  %v48_v2 = vld [vmem:[%s179_s1 + $0x4] sm:$0xf]  ;;  %v29_v4 = vld [vmem:[#allocation2 + $0x8] sm:$0xff]  ;;  %32 = vst [vmem:[#allocation1] ss:$2 sm:$0xff] %v28_v3  ;;  %s148_s0 = smov [#allocation5]  }
   0x8   :  { %51 = vperm.xlu0 %91, %v47_v1   ;;  %36 = vst [vmem:[#allocation1 + $0x10] ss:$2 sm:$0xff] %v29_v4  ;;  %s69_s20 = sshll.u32 %s148_s0, 4  ;;  %s71_s22 = sshll.u32 %s180_s2, 4  ;;  %s70_s20 = int_to_ptr.vmem [resolvable:$true] %s69_s20  ;;  %s72_s22 = int_to_ptr.hbm [resolvable:$true] %s71_s22 }
   0x9   :  { %s149_s23 = smov 256   ;;  %s150_s24 = smov 16  }
   0xe   :  { %v33_v5 = vld.sshfl [vmem:[#allocation1] sm:$0xff pattern:$0x75316420]  ;;  %v34_v6 = vld.sshfl [vmem:[#allocation1 + $0x8] sm:$0xff pattern:$0x75316420] }
   0xf   :  { %v37_v7 = vld.sshfl [vmem:[#allocation1 + $0x10] sm:$0xff pattern:$0x75316420]  ;;  %v38_v8 = vld.sshfl [vmem:[#allocation1 + $0x18] sm:$0xff pattern:$0x75316420] }
  0x10   :  { %55 = vperm.xlu0 %91, %v48_v2   ;;  %43 = vst [vmem:[#allocation5] sm:$0xf] %v33_v5 }
  0x11   :  { %44 = vst [vmem:[#allocation5 + $0x8] sm:$0xf] %v34_v6 }
  0x12   :  { %45 = vst [vmem:[#allocation5 + $0x10] sm:$0xf] %v37_v7 }
  0x13   :  { %46 = vst [vmem:[#allocation5 + $0x18] sm:$0xf] %v38_v8 }
  0x7a   :  { %v52_v9 = vpop.permute.xlu0 %51 }
  0x7b   :  { %v57_v10 = vrot.slane %v52_v9, 4 }
  0x7d   :  { %61 = vst [vmem:[#allocation5] sm:$0xf0] %v57_v10 }
  0x7e   :  { %62 = vst [vmem:[#allocation5 + $0x8] sm:$0xf0] %v57_v10 }
  0x82   :  { %v56_v11 = vpop.permute.xlu0 %55 }
  0x83   :  { %v58_v12 = vrot.slane %v56_v11, 4 }
  0x85   :  { %63 = vst [vmem:[#allocation5 + $0x10] sm:$0xf0] %v58_v12 }
  0x86   :  { %64 = vst [vmem:[#allocation5 + $0x18] sm:$0xf0] %v58_v12 }
  0x87   :  { %77 = dma.vmem_to_hbm [thread:$0]  %s70_s20, 512, %s72_s22, [#allocation4], %s149_s23, %s149_s23, %s150_s24  }
  0x88   :  { %142 = dma.done.wait [#allocation4], 512  }
  0x89   :  { %143 = vsyncadd [#allocation4], 4294966784 }
  0x8a   :  { %82 = vsyncpa [#allocation3], 1 }
  0x8b   :  { %83 = vsyncpa [#allocation4], 1 }

</bundles_post_ra>
